<compile_context>
chip_gen: v5e
topology: v5e:2x2
jax: 0.10.0
libtpu: 0.0.40
codegen_flags: <defaults>
</compile_context>

<pallas_src>
import jax
import jax.numpy as jnp
from jax.experimental import pallas as pl
from jax.experimental.pallas import tpu as pltpu


def _round_up(n, m):
    return ((n + m - 1) // m) * m


def _lstm_cell_kernel(act_ref, c_ref, wg_ref, bg_ref, wc_ref, bc_ref,
                      h_out_ref, c_out_ref, prob_out_ref, logits_acc):
    """Grid = (batch tiles, hidden-column chunks).

    act_ref  : (bb, KP)    [x | pad | h | pad] in the MXU weight dtype (bf16 path halves DMA)
    c_ref    : (bb, bh)    f32 cell-state chunk (kept OUT of the matmul)
    wg_ref   : (KP, 4*bh)  gate-weight column tile, chunk-interleaved [i|f|g|o]
    bg_ref   : (1, 4*bh)   fused gate bias tile (b_ih + b_hh), f32
    wc_ref   : (bh, OP)    classifier weight rows for this hidden chunk
    bc_ref   : (1, OP)     classifier bias; padded lanes = -1e30 softmax mask (must stay f32)
    h_out_ref, c_out_ref : (bb, bh)  lane-aligned full-block chunk stores
    prob_out_ref : (bb, OP)          written once, at the last chunk
    logits_acc   : (bb, OP) f32 scratch accumulating h' @ W_c^T + b_c across chunks
    """
    t = pl.program_id(1)
    bh = c_ref.shape[-1]
    wdt = wg_ref.dtype

    @pl.when(t == 0)
    def _():
        logits_acc[...] = jnp.broadcast_to(bc_ref[...], logits_acc.shape)

    # One fused matmul per column tile; f32 accumulation on the MXU.
    gates = (jnp.dot(act_ref[...], wg_ref[...],
                     preferred_element_type=jnp.float32)
             + bg_ref[...])                               # (bb, 4*bh)

    # Lane-aligned gate slices (bh is a multiple of 128).
    i_g = jax.nn.sigmoid(gates[:, 0 * bh:1 * bh])
    f_g = jax.nn.sigmoid(gates[:, 1 * bh:2 * bh])
    g_g = jnp.tanh(gates[:, 2 * bh:3 * bh])
    o_g = jax.nn.sigmoid(gates[:, 3 * bh:4 * bh])

    c_new = f_g * c_ref[...] + i_g * g_g                  # f32 cell state
    h_new = o_g * jnp.tanh(c_new)

    h_out_ref[...] = h_new.astype(h_out_ref.dtype)        # unmasked full-block stores
    c_out_ref[...] = c_new.astype(c_out_ref.dtype)

    # Classifier contribution of this hidden chunk.
    logits_acc[...] += jnp.dot(h_new.astype(wdt), wc_ref[...],
                               preferred_element_type=jnp.float32)

    @pl.when(t == pl.num_programs(1) - 1)
    def _():
        logits = logits_acc[...]
        m = jnp.max(logits, axis=-1, keepdims=True)
        e = jnp.exp(logits - m)                           # padded lanes -> exp(-huge) = 0
        # Exact division (not approx reciprocal): probabilities sum to 1 to f32 precision.
        prob_out_ref[...] = (e / jnp.sum(e, axis=-1, keepdims=True)
                             ).astype(prob_out_ref.dtype)


def pack_params(params, *, weight_dtype=jnp.float32, block_h=None):
    """One-time packing of weights into a lane-aligned, chunk-interleaved layout.

    Call ONCE at parameter-creation time (not per forward step): rebuilding padded
    weights in HBM on every call would dominate recurrent/sequence use.
    `block_h` (multiple of 128, divides round_up(H,128)) sets the gate-column tile so
    the per-step weight tile fits VMEM at large H (e.g. 128-512 on v7x for H~2k).
    """
    f32 = jnp.float32
    w_ih, w_hh = params["w_ih"], params["w_hh"]
    b_ih, b_hh = params["b_ih"], params["b_hh"]
    w_c, b_c = params["w_c"], params["b_c"]

    H = w_hh.shape[1]
    I = w_ih.shape[1]
    O = w_c.shape[0]
    IP, HP, OP = _round_up(I, 128), _round_up(H, 128), _round_up(O, 128)
    KP = IP + HP
    bh = HP if block_h is None else block_h
    assert bh % 128 == 0 and HP % bh == 0, "block_h must be a 128-multiple dividing HP"
    n_chunks = HP // bh
    wdt = weight_dtype

    # Gate weights: rows = [x-part | pad | h-part | pad]; columns chunk-interleaved so
    # each (KP, 4*bh) column tile holds [i|f|g|o] for one hidden chunk.
    wg = jnp.zeros((KP, 4, HP), f32)
    for k in range(4):
        wg = wg.at[:I, k, :H].set(w_ih[k * H:(k + 1) * H, :].T.astype(f32))
        wg = wg.at[IP:IP + H, k, :H].set(w_hh[k * H:(k + 1) * H, :].T.astype(f32))
    wg = (wg.reshape(KP, 4, n_chunks, bh).transpose(0, 2, 1, 3)
            .reshape(KP, 4 * HP).astype(wdt))

    bg = jnp.zeros((4, HP), f32).at[:, :H].set(
        (b_ih + b_hh).astype(f32).reshape(4, H))
    bg = bg.reshape(4, n_chunks, bh).transpose(1, 0, 2).reshape(1, 4 * HP)  # stays f32

    wc = jnp.zeros((HP, OP), f32).at[:H, :O].set(w_c.T.astype(f32)).astype(wdt)
    # bc must stay f32: the -1e30 softmax mask would overflow in bf16.
    bc = (jnp.zeros((1, OP), f32)
          .at[0, :O].set(b_c.astype(f32))
          .at[0, O:].set(-1e30))

    return dict(wg=wg, bg=bg, wc=wc, bc=bc,
                I=I, H=H, O=O, IP=IP, HP=HP, OP=OP, KP=KP,
                bh=bh, n_chunks=n_chunks)


def lstm_cell_forward(x, hc, packed, *, block_b=None):
    """x: (B, input_size); hc = (hx, cx), each (B, hidden_size); packed = pack_params(...).
    Returns (prob, (hx_new, cx_new)) - same structure as the PyTorch module."""
    hx, cx = hc
    B, I = x.shape
    f32 = jnp.float32
    H, O = packed["H"], packed["O"]
    IP, HP, OP, KP = packed["IP"], packed["HP"], packed["OP"], packed["KP"]
    bh, n_chunks = packed["bh"], packed["n_chunks"]
    wdt = packed["wg"].dtype
    assert I == packed["I"] and hx.shape[1] == H and cx.shape[1] == H

    # Per-call activation packing (input-dependent, cheap). The x|h slab is built
    # directly in the MXU weight dtype (bf16 path halves activation DMA); the cell
    # state stays f32 in its own ref and never enters the matmul.
    act = (jnp.zeros((B, KP), wdt)
           .at[:, :I].set(x.astype(wdt))
           .at[:, IP:IP + H].set(hx.astype(wdt)))
    c_pad = jnp.zeros((B, HP), f32).at[:, :H].set(cx.astype(f32))

    # Batch tile: default = whole batch. On v6e/v7x prefer bb >= 256 (>=128 on v5e)
    # when the batch allows, to fill the MXU M-dimension.
    bb = B if block_b is None else block_b
    assert B % bb == 0, "block_b must divide the batch"
    assert bb == B or bb % 8 == 0, "batch tile must be a sublane multiple"
    grid = (B // bb, n_chunks)

    # Footprint-derived VMEM limit. 32 MiB is already the v6e/v7x scoped default (and a
    # raise over v5e's 16 MiB); keep tile choices under ~48 MiB on v7x (64 MiB physical).
    wbytes = jnp.dtype(wdt).itemsize
    need = (2 * (bb * KP * wbytes            # act slab (double-buffered)
                 + bb * bh * 4               # cell-state chunk
                 + KP * 4 * bh * wbytes      # gate-weight column tile
                 + 4 * bh * 4                # gate-bias tile
                 + bh * OP * wbytes          # classifier rows
                 + OP * 4                    # classifier bias
                 + 2 * bb * bh * 4           # h', c' out tiles
                 + bb * OP * 4)              # prob out tile
            + bb * OP * 4)                   # logits scratch
    vmem_limit = min(max(32 << 20, int(1.25 * need)), 100 << 20)

    flops = 2 * B * KP * 4 * HP + 2 * B * HP * OP + 10 * B * HP
    transcendentals = 5 * B * HP + B * OP
    bytes_accessed = ((B // bb) * (packed["wg"].size * wbytes
                                   + packed["wc"].size * wbytes
                                   + packed["bg"].size * 4 + packed["bc"].size * 4)
                      + act.size * wbytes + c_pad.size * 4
                      + B * (2 * HP + OP) * 4)

    h_out, c_out, prob_out = pl.pallas_call(
        _lstm_cell_kernel,
        out_shape=(jax.ShapeDtypeStruct((B, HP), f32),
                   jax.ShapeDtypeStruct((B, HP), f32),
                   jax.ShapeDtypeStruct((B, OP), f32)),
        grid=grid,
        in_specs=[
            pl.BlockSpec((bb, KP), lambda i, t: (i, 0)),       # x|h slab (revisited over t)
            pl.BlockSpec((bb, bh), lambda i, t: (i, t)),       # cell-state chunk (f32)
            pl.BlockSpec((KP, 4 * bh), lambda i, t: (0, t)),   # gate-weight column tile
            pl.BlockSpec((1, 4 * bh), lambda i, t: (0, t)),    # gate-bias tile
            pl.BlockSpec((bh, OP), lambda i, t: (t, 0)),       # classifier rows for chunk
            pl.BlockSpec((1, OP), lambda i, t: (0, 0)),        # classifier bias + mask
        ],
        out_specs=(
            pl.BlockSpec((bb, bh), lambda i, t: (i, t)),       # h' chunk
            pl.BlockSpec((bb, bh), lambda i, t: (i, t)),       # c' chunk
            pl.BlockSpec((bb, OP), lambda i, t: (i, 0)),       # prob (finalized at last t)
        ),
        scratch_shapes=[pltpu.VMEM((bb, OP), f32)],
        compiler_params=pltpu.CompilerParams(
            # Do NOT batch-shard across TensorCores: per-TC VMEM would duplicate the
            # weight DMA (the binding resource). Both axes run sequentially on one core.
            dimension_semantics=("arbitrary", "arbitrary"),
            vmem_limit_bytes=vmem_limit),
        cost_estimate=pl.CostEstimate(flops=flops,
                                      transcendentals=transcendentals,
                                      bytes_accessed=bytes_accessed),
    )(act, c_pad, packed["wg"], packed["bg"], packed["wc"], packed["bc"])

    h_new = h_out[:, :H].astype(x.dtype)
    c_new = c_out[:, :H].astype(x.dtype)
    prob = prob_out[:, :O].astype(x.dtype)
    return prob, (h_new, c_new)


def init_params(key, input_size, output_size, hidden_size, dtype=jnp.float32):
    """Deterministic init mirroring PyTorch's default U(-1/sqrt(H), 1/sqrt(H))."""
    k = jax.random.split(key, 6)
    s = 1.0 / jnp.sqrt(hidden_size)
    return {
        "w_ih": jax.random.uniform(k[0], (4 * hidden_size, input_size), dtype, -s, s),
        "w_hh": jax.random.uniform(k[1], (4 * hidden_size, hidden_size), dtype, -s, s),
        "b_ih": jax.random.uniform(k[2], (4 * hidden_size,), dtype, -s, s),
        "b_hh": jax.random.uniform(k[3], (4 * hidden_size,), dtype, -s, s),
        "w_c":  jax.random.uniform(k[4], (output_size, hidden_size), dtype, -s, s),
        "b_c":  jax.random.uniform(k[5], (output_size,), dtype, -s, s),
    }


def _reference(x, hc, params):
    """Pure-JAX reference matching PyTorch LSTMCell exactly (high-precision matmuls)."""
    hx, cx = hc
    hp = jax.lax.Precision.HIGHEST
    gates = (jnp.dot(x, params["w_ih"].T, precision=hp) + params["b_ih"]
             + jnp.dot(hx, params["w_hh"].T, precision=hp) + params["b_hh"])
    H = hx.shape[1]
    i = jax.nn.sigmoid(gates[:, 0 * H:1 * H])
    f = jax.nn.sigmoid(gates[:, 1 * H:2 * H])
    g = jnp.tanh(gates[:, 2 * H:3 * H])
    o = jax.nn.sigmoid(gates[:, 3 * H:4 * H])
    c_new = f * cx + i * g
    h_new = o * jnp.tanh(c_new)
    logits = jnp.dot(h_new, params["w_c"].T, precision=hp) + params["b_c"]
    return jax.nn.softmax(logits, axis=1), (h_new, c_new)


if __name__ == "__main__":
    # --- Test 1: module demo shapes; f32 and bf16 weight paths -------------------
    B, input_size, hidden_size, output_size = 8, 16, 32, 8
    key = jax.random.PRNGKey(0)
    kp, kx, kh, kc = jax.random.split(key, 4)
    params = init_params(kp, input_size, output_size, hidden_size)
    x = jax.random.normal(kx, (B, input_size), jnp.float32)
    hx = jax.random.normal(kh, (B, hidden_size), jnp.float32)
    cx = jax.random.normal(kc, (B, hidden_size), jnp.float32)

    prob_r, (hx_r, cx_r) = _reference(x, (hx, cx), params)

    packed = pack_params(params)                       # one-time weight packing
    prob, (hx_new, cx_new) = lstm_cell_forward(x, (hx, cx), packed)
    jax.block_until_ready((prob, hx_new, cx_new))
    assert jnp.allclose(hx_new, hx_r, atol=1e-5, rtol=1e-5)
    assert jnp.allclose(cx_new, cx_r, atol=1e-5, rtol=1e-5)
    assert jnp.allclose(prob, prob_r, atol=1e-4, rtol=1e-4)
    assert jnp.allclose(jnp.sum(prob, axis=1), 1.0, atol=1e-5)

    packed_bf16 = pack_params(params, weight_dtype=jnp.bfloat16)   # v6e/v7x MXU path
    prob_b, (hx_b, cx_b) = lstm_cell_forward(x, (hx, cx), packed_bf16)
    jax.block_until_ready((prob_b, hx_b, cx_b))
    assert jnp.allclose(hx_b, hx_r, atol=6e-2, rtol=6e-2)
    assert jnp.allclose(cx_b, cx_r, atol=6e-2, rtol=6e-2)
    assert jnp.allclose(prob_b, prob_r, atol=6e-2, rtol=6e-2)

    # --- Test 2: exercise gate-column tiling + batch tiling (H=256 -> 2 chunks) --
    B2, I2, H2, O2 = 16, 16, 256, 8
    kp2, kx2, kh2, kc2 = jax.random.split(jax.random.PRNGKey(1), 4)
    params2 = init_params(kp2, I2, O2, H2)
    x2 = jax.random.normal(kx2, (B2, I2), jnp.float32)
    hx2 = jax.random.normal(kh2, (B2, H2), jnp.float32)
    cx2 = jax.random.normal(kc2, (B2, H2), jnp.float32)
    prob2_r, (hx2_r, cx2_r) = _reference(x2, (hx2, cx2), params2)

    packed2 = pack_params(params2, block_h=128)        # 2 gate-column chunks
    prob2, (hx2_n, cx2_n) = lstm_cell_forward(x2, (hx2, cx2), packed2, block_b=8)
    jax.block_until_ready((prob2, hx2_n, cx2_n))
    assert jnp.allclose(hx2_n, hx2_r, atol=2e-3, rtol=2e-3)
    assert jnp.allclose(cx2_n, cx2_r, atol=2e-3, rtol=2e-3)
    assert jnp.allclose(prob2, prob2_r, atol=2e-3, rtol=2e-3)
    assert jnp.allclose(jnp.sum(prob2, axis=1), 1.0, atol=1e-5)

    print("KERNEL_OK")
</pallas_src>

<mosaic_0001>
module attributes {stable_mosaic.version = 11 : i64} {
  func.func @_lstm_cell_kernel(%arg0: i32, %arg1: i32, %arg2: memref<8x256xf32, #tpu.memory_space<vmem>>, %arg3: memref<8x128xf32, #tpu.memory_space<vmem>>, %arg4: memref<256x512xf32, #tpu.memory_space<vmem>>, %arg5: memref<1x512xf32, #tpu.memory_space<vmem>>, %arg6: memref<128x128xf32, #tpu.memory_space<vmem>>, %arg7: memref<1x128xf32, #tpu.memory_space<vmem>>, %arg8: memref<8x128xf32, #tpu.memory_space<vmem>>, %arg9: memref<8x128xf32, #tpu.memory_space<vmem>>, %arg10: memref<8x128xf32, #tpu.memory_space<vmem>>, %arg11: memref<8x128xf32, #tpu.memory_space<vmem>>) attributes {dimension_semantics = [#tpu.dimension_semantics<arbitrary>, #tpu.dimension_semantics<arbitrary>], iteration_bounds = array<i64: 1, 1>, scalar_prefetch = 0 : i64, scratch_operands = 1 : i64, tpu.core_type = #tpu.core_type<tc>, window_params = [{transform_indices = @transform_0, window_bounds = array<i64: 8, 256>}, {transform_indices = @transform_1, window_bounds = array<i64: 8, 128>}, {transform_indices = @transform_2, window_bounds = array<i64: 256, 512>}, {transform_indices = @transform_3, window_bounds = array<i64: 1, 512>}, {transform_indices = @transform_4, window_bounds = array<i64: 128, 128>}, {pipeline_mode = #tpu.pipeline_mode<synchronous>, transform_indices = @transform_5, window_bounds = array<i64: 1, 128>}, {transform_indices = @transform_6, window_bounds = array<i64: 8, 128>}, {transform_indices = @transform_7, window_bounds = array<i64: 8, 128>}, {transform_indices = @transform_8, window_bounds = array<i64: 8, 128>}]} {
    %c0_i32 = arith.constant 0 : i32
    %0 = arith.cmpi eq, %arg1, %c0_i32 : i32
    %1 = arith.extui %0 : i1 to i32
    %c0_i32_0 = arith.constant 0 : i32
    %2 = arith.cmpi ne, %1, %c0_i32_0 : i32
    scf.if %2 {
      %c0_24 = arith.constant 0 : index
      %c0_25 = arith.constant 0 : index
      %45 = vector.load %arg7[%c0_24, %c0_25] : memref<1x128xf32, #tpu.memory_space<vmem>>, vector<1x128xf32>
      %46 = vector.shape_cast %45 : vector<1x128xf32> to vector<1x128xf32>
      %47 = vector.broadcast %46 : vector<1x128xf32> to vector<8x128xf32>
      %c0_26 = arith.constant 0 : index
      %c0_27 = arith.constant 0 : index
      %48 = vector.load %arg11[%c0_26, %c0_27] : memref<8x128xf32, #tpu.memory_space<vmem>>, vector<8x128xf32>
      tpu.vector_store %arg11[%c0_26, %c0_27], %47 {strides = array<i32>} : memref<8x128xf32, #tpu.memory_space<vmem>>, vector<8x128xf32>,
    } else {
    }
    %c0 = arith.constant 0 : index
    %c0_1 = arith.constant 0 : index
    %3 = vector.load %arg2[%c0, %c0_1] : memref<8x256xf32, #tpu.memory_space<vmem>>, vector<8x256xf32>
    %c0_2 = arith.constant 0 : index
    %c0_3 = arith.constant 0 : index
    %4 = vector.load %arg4[%c0_2, %c0_3] : memref<256x512xf32, #tpu.memory_space<vmem>>, vector<256x512xf32>
    %cst = arith.constant dense<0.000000e+00> : vector<8x512xf32>
    %5 = tpu.matmul %3, %4, %cst {dimension_numbers = #tpu.dot_dimension_numbers<[1], [0], [0], [1], [0, 0, 1, 1], [], []>} : vector<8x256xf32>, vector<256x512xf32>, vector<8x512xf32> -> vector<8x512xf32>
    %c0_4 = arith.constant 0 : index
    %c0_5 = arith.constant 0 : index
    %6 = vector.load %arg5[%c0_4, %c0_5] : memref<1x512xf32, #tpu.memory_space<vmem>>, vector<1x512xf32>
    %7 = vector.broadcast %6 : vector<1x512xf32> to vector<8x512xf32>
    %8 = arith.addf %5, %7 : vector<8x512xf32>
    %9 = vector.extract_strided_slice %8 {offsets = [0, 0], sizes = [8, 128], strides = [1, 1]} : vector<8x512xf32> to vector<8x128xf32>
    %10 = arith.negf %9 : vector<8x128xf32>
    %11 = math.exp %10 : vector<8x128xf32>
    %cst_6 = arith.constant 1.000000e+00 : f32
    %12 = vector.broadcast %cst_6 : f32 to vector<8x128xf32>
    %13 = arith.addf %12, %11 : vector<8x128xf32>
    %14 = arith.divf %12, %13 : vector<8x128xf32>
    %15 = vector.extract_strided_slice %8 {offsets = [0, 128], sizes = [8, 128], strides = [1, 1]} : vector<8x512xf32> to vector<8x128xf32>
    %16 = arith.negf %15 : vector<8x128xf32>
    %17 = math.exp %16 : vector<8x128xf32>
    %cst_7 = arith.constant 1.000000e+00 : f32
    %18 = vector.broadcast %cst_7 : f32 to vector<8x128xf32>
    %19 = arith.addf %18, %17 : vector<8x128xf32>
    %20 = arith.divf %18, %19 : vector<8x128xf32>
    %21 = vector.extract_strided_slice %8 {offsets = [0, 256], sizes = [8, 128], strides = [1, 1]} : vector<8x512xf32> to vector<8x128xf32>
    %22 = math.tanh %21 : vector<8x128xf32>
    %23 = vector.extract_strided_slice %8 {offsets = [0, 384], sizes = [8, 128], strides = [1, 1]} : vector<8x512xf32> to vector<8x128xf32>
    %24 = arith.negf %23 : vector<8x128xf32>
    %25 = math.exp %24 : vector<8x128xf32>
    %cst_8 = arith.constant 1.000000e+00 : f32
    %26 = vector.broadcast %cst_8 : f32 to vector<8x128xf32>
    %27 = arith.addf %26, %25 : vector<8x128xf32>
    %28 = arith.divf %26, %27 : vector<8x128xf32>
    %c0_9 = arith.constant 0 : index
    %c0_10 = arith.constant 0 : index
    %29 = vector.load %arg3[%c0_9, %c0_10] : memref<8x128xf32, #tpu.memory_space<vmem>>, vector<8x128xf32>
    %30 = arith.mulf %20, %29 : vector<8x128xf32>
    %31 = arith.mulf %14, %22 : vector<8x128xf32>
    %32 = arith.addf %30, %31 : vector<8x128xf32>
    %33 = math.tanh %32 : vector<8x128xf32>
    %34 = arith.mulf %28, %33 : vector<8x128xf32>
    %c0_11 = arith.constant 0 : index
    %c0_12 = arith.constant 0 : index
    %35 = vector.load %arg8[%c0_11, %c0_12] : memref<8x128xf32, #tpu.memory_space<vmem>>, vector<8x128xf32>
    tpu.vector_store %arg8[%c0_11, %c0_12], %34 {strides = array<i32>} : memref<8x128xf32, #tpu.memory_space<vmem>>, vector<8x128xf32>,
    %c0_13 = arith.constant 0 : index
    %c0_14 = arith.constant 0 : index
    %36 = vector.load %arg9[%c0_13, %c0_14] : memref<8x128xf32, #tpu.memory_space<vmem>>, vector<8x128xf32>
    tpu.vector_store %arg9[%c0_13, %c0_14], %32 {strides = array<i32>} : memref<8x128xf32, #tpu.memory_space<vmem>>, vector<8x128xf32>,
    %c0_15 = arith.constant 0 : index
    %c0_16 = arith.constant 0 : index
    %37 = vector.load %arg11[%c0_15, %c0_16] : memref<8x128xf32, #tpu.memory_space<vmem>>, vector<8x128xf32>
    %c0_17 = arith.constant 0 : index
    %c0_18 = arith.constant 0 : index
    %38 = vector.load %arg6[%c0_17, %c0_18] : memref<128x128xf32, #tpu.memory_space<vmem>>, vector<128x128xf32>
    %cst_19 = arith.constant dense<0.000000e+00> : vector<8x128xf32>
    %39 = tpu.matmul %34, %38, %cst_19 {dimension_numbers = #tpu.dot_dimension_numbers<[1], [0], [0], [1], [0, 0, 1, 1], [], []>} : vector<8x128xf32>, vector<128x128xf32>, vector<8x128xf32> -> vector<8x128xf32>
    %40 = arith.addf %37, %39 : vector<8x128xf32>
    %c0_20 = arith.constant 0 : index
    %c0_21 = arith.constant 0 : index
    %41 = vector.load %arg11[%c0_20, %c0_21] : memref<8x128xf32, #tpu.memory_space<vmem>>, vector<8x128xf32>
    tpu.vector_store %arg11[%c0_20, %c0_21], %40 {strides = array<i32>} : memref<8x128xf32, #tpu.memory_space<vmem>>, vector<8x128xf32>,
    %c0_i32_22 = arith.constant 0 : i32
    %42 = arith.cmpi eq, %arg1, %c0_i32_22 : i32
    %43 = arith.extui %42 : i1 to i32
    %c0_i32_23 = arith.constant 0 : i32
    %44 = arith.cmpi ne, %43, %c0_i32_23 : i32
    scf.if %44 {
      %c0_24 = arith.constant 0 : index
      %c0_25 = arith.constant 0 : index
      %45 = vector.load %arg11[%c0_24, %c0_25] : memref<8x128xf32, #tpu.memory_space<vmem>>, vector<8x128xf32>
      %cst_26 = arith.constant dense<0xFF800000> : vector<8xf32>
      %46 = vector.multi_reduction <maximumf>, %45, %cst_26 [1] : vector<8x128xf32> to vector<8xf32>
      %47 = vector.shape_cast %46 : vector<8xf32> to vector<8x1xf32>
      %48 = vector.broadcast %47 : vector<8x1xf32> to vector<8x128xf32>
      %49 = arith.subf %45, %48 : vector<8x128xf32>
      %50 = math.exp %49 : vector<8x128xf32>
      %cst_27 = arith.constant dense<0.000000e+00> : vector<8xf32>
      %51 = vector.multi_reduction <add>, %50, %cst_27 [1] : vector<8x128xf32> to vector<8xf32>
      %52 = vector.shape_cast %51 : vector<8xf32> to vector<8x1xf32>
      %53 = vector.broadcast %52 : vector<8x1xf32> to vector<8x128xf32>
      %54 = arith.divf %50, %53 : vector<8x128xf32>
      %c0_28 = arith.constant 0 : index
      %c0_29 = arith.constant 0 : index
      %55 = vector.load %arg10[%c0_28, %c0_29] : memref<8x128xf32, #tpu.memory_space<vmem>>, vector<8x128xf32>
      tpu.vector_store %arg10[%c0_28, %c0_29], %54 {strides = array<i32>} : memref<8x128xf32, #tpu.memory_space<vmem>>, vector<8x128xf32>,
    } else {
    }
    return
  }
  func.func @transform_0(%arg0: i32, %arg1: i32) -> (i32, i32) {
    %c0_i32 = arith.constant 0 : i32
    %c0_i32_0 = arith.constant 0 : i32
    return %arg0, %c0_i32 : i32, i32
  }
  func.func @transform_1(%arg0: i32, %arg1: i32) -> (i32, i32) {
    %c0_i32 = arith.constant 0 : i32
    return %arg0, %arg1 : i32, i32
  }
  func.func @transform_2(%arg0: i32, %arg1: i32) -> (i32, i32) {
    %c0_i32 = arith.constant 0 : i32
    %c0_i32_0 = arith.constant 0 : i32
    return %c0_i32, %arg1 : i32, i32
  }
  func.func @transform_3(%arg0: i32, %arg1: i32) -> (i32, i32) {
    %c0_i32 = arith.constant 0 : i32
    %c0_i32_0 = arith.constant 0 : i32
    return %c0_i32, %arg1 : i32, i32
  }
  func.func @transform_4(%arg0: i32, %arg1: i32) -> (i32, i32) {
    %c0_i32 = arith.constant 0 : i32
    %c0_i32_0 = arith.constant 0 : i32
    return %arg1, %c0_i32 : i32, i32
  }
  func.func @transform_5(%arg0: i32, %arg1: i32) -> (i32, i32) {
    %c0_i32 = arith.constant 0 : i32
    %c0_i32_0 = arith.constant 0 : i32
    %c0_i32_1 = arith.constant 0 : i32
    return %c0_i32, %c0_i32_0 : i32, i32
  }
  func.func @transform_6(%arg0: i32, %arg1: i32) -> (i32, i32) {
    %c0_i32 = arith.constant 0 : i32
    return %arg0, %arg1 : i32, i32
  }
  func.func @transform_7(%arg0: i32, %arg1: i32) -> (i32, i32) {
    %c0_i32 = arith.constant 0 : i32
    return %arg0, %arg1 : i32, i32
  }
  func.func @transform_8(%arg0: i32, %arg1: i32) -> (i32, i32) {
    %c0_i32 = arith.constant 0 : i32
    %c0_i32_0 = arith.constant 0 : i32
    return %arg0, %c0_i32 : i32, i32
  }
}

</mosaic_0001>

<bundles_post_ra>
// kernel: tpu_custom_call.1
= control target key start
LH: loop header
LB: loop body
LE: loop exit
PB: predicated region body
PF: predicated region fallthrough
CT: control target
= control target key end

     0   :  { %14 = vsyncpa [#allocation4], 0  ;;  %s939_s0 = inlined_call_operand.hbm [shape: f32[8,256], index: 0, kind: input, shape index: {}]   ;;  %s940_s1 = inlined_call_operand.hbm [shape: f32[8,128], index: 1, kind: input, shape index: {}]   ;;  %s941_s2 = inlined_call_operand.hbm [shape: f32[256,512], index: 2, kind: input, shape index: {}]   ;;  %s942_s3 = inlined_call_operand.hbm [shape: f32[1,512], index: 3, kind: input, shape index: {}]   ;;  %s943_s4 = inlined_call_operand.hbm [shape: f32[128,128], index: 4, kind: input, shape index: {}]   ;;  %s944_s5 = inlined_call_operand.vmem [shape: f32[1,128], index: 5, kind: input, shape index: {}]   ;;  %s945_s6 = inlined_call_operand.hbm [shape: f32[8,128], index: 6, kind: output, shape index: {0}]   ;;  %s946_s7 = inlined_call_operand.hbm [shape: f32[8,128], index: 7, kind: output, shape index: {1}]   ;;  %s947_s8 = inlined_call_operand.hbm [shape: f32[8,128], index: 8, kind: output, shape index: {2}]  }
   0x1   :  { %15 = vsyncpa [#allocation7], 0 }
   0x2   :  { %16 = vsyncpa [#allocation10], 0 }
   0x3   :  { %17 = vsyncpa [#allocation5], 0  ;;  %s35_s29 = sshll.u32 %s940_s1, 4  ;;  %s36_s29 = int_to_ptr.hbm [resolvable:$true] %s35_s29 }
   0x4   :  { %18 = vsyncpa [#allocation14], 0  ;;  %s829_s30 = smov [#allocation6]   ;;  %s59_s12 = sshll.u32 %s942_s3, 4  ;;  %s60_s12 = int_to_ptr.hbm [resolvable:$true] %s59_s12 }
   0x5   :  { %s37_s9 = sshll.u32 %s829_s30, 4  ;;  %s830_s13 = smov [#allocation9]   ;;  %s38_s9 = int_to_ptr.vmem [resolvable:$true] %s37_s9 }
   0x6   :  { %40 = dma.hbm_to_vmem [thread:$0]  %s36_s29, 128, %s38_s9, [#allocation7]  }
   0x7   :  { %s61_s14 = sshll.u32 %s830_s13, 4  ;;  %s24_s17 = sshll.u32 %s939_s0, 4  ;;  %s62_s14 = int_to_ptr.vmem [resolvable:$true] %s61_s14  ;;  %s25_s17 = int_to_ptr.hbm [resolvable:$true] %s24_s17 }
   0x8   :  { %64 = dma.hbm_to_vmem [thread:$0]  %s60_s12, 64, %s62_s14, [#allocation10]  }
   0x9   :  { %s45_s19 = sshll.u32 %s941_s2, 4  ;;  %s831_s20 = smov [#allocation3]   ;;  %s46_s19 = int_to_ptr.hbm [resolvable:$true] %s45_s19 }
   0xa   :  { %s26_s21 = sshll.u32 %s831_s20, 4  ;;  %s832_s3 = smov [#allocation8]   ;;  %s27_s21 = int_to_ptr.vmem [resolvable:$true] %s26_s21 }
   0xb   :  { %29 = dma.hbm_to_vmem [thread:$0]  %s25_s17, 256, %s27_s21, [#allocation4]  }
   0xc   :  { %s47_s22 = sshll.u32 %s832_s3, 4  ;;  %s833_s23 = smov 512   ;;  %s48_s22 = int_to_ptr.vmem [resolvable:$true] %s47_s22 }
   0xd   :  { %s834_s24 = smov 32   ;;  %s69_s26 = sshll.u32 %s943_s4, 4  ;;  %s70_s26 = int_to_ptr.hbm [resolvable:$true] %s69_s26 }
   0xe   :  { %53 = dma.hbm_to_vmem [thread:$0]  %s46_s19, 16384, %s48_s22, [#allocation7], %s833_s23, %s833_s23, %s834_s24  }
   0xf   :  { %s835_s27 = smov [#allocation11]   ;;  %s836_s2 = smov 128  }
  0x10   :  { %s71_s28 = sshll.u32 %s835_s27, 4  ;;  %s837_s29 = smov 8   ;;  %s72_s28 = int_to_ptr.vmem [resolvable:$true] %s71_s28 }
  0x11   :  { %77 = dma.hbm_to_vmem [thread:$0]  %s70_s26, 2048, %s72_s28, [#allocation10], %s836_s2, %s836_s2, %s837_s29  }
  0x12   :  { %819 = dma.done.wait [#allocation4], 256  }
  0x13   :  { %820 = vsyncadd [#allocation4], 4294967040 }
  0x14   :  { %821 = dma.done.wait [#allocation7], 16512  }
  0x15   :  { %822 = vsyncadd [#allocation7], 4294950784 }
  0x16   :  { %823 = dma.done.wait [#allocation10], 2112  }
  0x17   :  { %824 = vsyncadd [#allocation10], 4294965184  ;;  %v172_v0 = vld [vmem:[#allocation8 + $0x1e8] sm:$0xff]  ;;  %v171_v3 = vld [vmem:[#allocation8 + $0x1e0] sm:$0xff]  ;;  %s559_s11 = sshll.u32 %s946_s7, 4  ;;  %s838_s12 = smov [#allocation13]   ;;  %s560_s11 = int_to_ptr.hbm [resolvable:$true] %s559_s11 }
  0x18   :  { %v168_v1 = vld [vmem:[#allocation8 + $0x1c8] sm:$0xff]  ;;  %289 = vmatpush.msra.mxu2 %v172_v0  ;;  %249 = vmatpush.msra.mxu0 %v171_v3  ;;  %v167_v6 = vld [vmem:[#allocation8 + $0x1c0] sm:$0xff]  ;;  %v174_v61 = vld [vmem:[#allocation8 + $0x1f8] sm:$0xff]  ;;  %s557_s13 = sshll.u32 %s838_s12, 4  ;;  %s839_s14 = smov [#allocation12]   ;;  %s558_s13 = int_to_ptr.vmem [resolvable:$true] %s557_s13 }
  0x19   :  { %v236_v2 = vld [vmem:[#allocation8 + $0x3e8] sm:$0xff]  ;;  %v235_v7 = vld [vmem:[#allocation8 + $0x3e0] sm:$0xff]  ;;  %v238_v0 = vld [vmem:[#allocation8 + $0x3f8] sm:$0xff]  ;;  %s548_s17 = sshll.u32 %s945_s6, 4  ;;  %s840_s7 = smov [#allocation15]   ;;  %s549_s17 = int_to_ptr.hbm [resolvable:$true] %s548_s17 }
  0x1a   :  { %309 = vmatpush.msra.mxu3 %v236_v2  ;;  %v232_v4 = vld [vmem:[#allocation8 + $0x3c8] sm:$0xff]  ;;  %290 = vmatpush.msra.mxu2 %v168_v1  ;;  %v163_v9 = vld [vmem:[#allocation8 + $0x1a0] sm:$0xff]  ;;  %v170_v1 = vld [vmem:[#allocation8 + $0x1d8] sm:$0xff]  ;;  %s568_s1 = sshll.u32 %s840_s7, 4  ;;  %s570_s19 = sshll.u32 %s947_s8, 4  ;;  %s569_s1 = int_to_ptr.vmem [resolvable:$true] %s568_s1  ;;  %s571_s19 = int_to_ptr.hbm [resolvable:$true] %s570_s19 }
  0x1b   :  { %v164_v5 = vld [vmem:[#allocation8 + $0x1a8] sm:$0xff]  ;;  %v231_v10 = vld [vmem:[#allocation8 + $0x3c0] sm:$0xff]  ;;  %250 = vmatpush.msra.mxu0 %v167_v6  ;;  %269 = vmatpush.msra.mxu1 %v235_v7  ;;  %v173_v2 = vld [vmem:[#allocation8 + $0x1f0] sm:$0xff] }
  0x1c   :  { %310 = vmatpush.msra.mxu3 %v232_v4  ;;  %v228_v8 = vld [vmem:[#allocation8 + $0x3a8] sm:$0xff]  ;;  %291 = vmatpush.msra.mxu2 %v164_v5  ;;  %v159_v13 = vld [vmem:[#allocation8 + $0x180] sm:$0xff]  ;;  %v234_v4 = vld [vmem:[#allocation8 + $0x3d8] sm:$0xff] }
  0x1d   :  { %v160_v11 = vld [vmem:[#allocation8 + $0x188] sm:$0xff]  ;;  %v227_v14 = vld [vmem:[#allocation8 + $0x3a0] sm:$0xff]  ;;  %251 = vmatpush.msra.mxu0 %v163_v9  ;;  %270 = vmatpush.msra.mxu1 %v231_v10  ;;  %v166_v5 = vld [vmem:[#allocation8 + $0x1b8] sm:$0xff] }
  0x1e   :  { %v224_v12 = vld [vmem:[#allocation8 + $0x388] sm:$0xff]  ;;  %311 = vmatpush.msra.mxu3 %v228_v8  ;;  %292 = vmatpush.msra.mxu2 %v160_v11  ;;  %v155_v17 = vld [vmem:[#allocation8 + $0x160] sm:$0xff]  ;;  %v169_v6 = vld [vmem:[#allocation8 + $0x1d0] sm:$0xff] }
  0x1f   :  { %v156_v15 = vld [vmem:[#allocation8 + $0x168] sm:$0xff]  ;;  %v223_v18 = vld [vmem:[#allocation8 + $0x380] sm:$0xff]  ;;  %252 = vmatpush.msra.mxu0 %v159_v13  ;;  %271 = vmatpush.msra.mxu1 %v227_v14  ;;  %v237_v7 = vld [vmem:[#allocation8 + $0x3f0] sm:$0xff] }
  0x20   :  { %v220_v16 = vld [vmem:[#allocation8 + $0x368] sm:$0xff]  ;;  %312 = vmatpush.msra.mxu3 %v224_v12  ;;  %293 = vmatpush.msra.mxu2 %v156_v15  ;;  %v151_v21 = vld [vmem:[#allocation8 + $0x140] sm:$0xff]  ;;  %v230_v8 = vld [vmem:[#allocation8 + $0x3b8] sm:$0xff] }
  0x21   :  { %v152_v19 = vld [vmem:[#allocation8 + $0x148] sm:$0xff]  ;;  %v219_v22 = vld [vmem:[#allocation8 + $0x360] sm:$0xff]  ;;  %253 = vmatpush.msra.mxu0 %v155_v17  ;;  %272 = vmatpush.msra.mxu1 %v223_v18  ;;  %v162_v9 = vld [vmem:[#allocation8 + $0x198] sm:$0xff] }
  0x22   :  { %v216_v20 = vld [vmem:[#allocation8 + $0x348] sm:$0xff]  ;;  %313 = vmatpush.msra.mxu3 %v220_v16  ;;  %294 = vmatpush.msra.mxu2 %v152_v19  ;;  %v147_v25 = vld [vmem:[#allocation8 + $0x120] sm:$0xff]  ;;  %v165_v10 = vld [vmem:[#allocation8 + $0x1b0] sm:$0xff] }
  0x23   :  { %v148_v23 = vld [vmem:[#allocation8 + $0x128] sm:$0xff]  ;;  %v215_v26 = vld [vmem:[#allocation8 + $0x340] sm:$0xff]  ;;  %254 = vmatpush.msra.mxu0 %v151_v21  ;;  %273 = vmatpush.msra.mxu1 %v219_v22  ;;  %v233_v12 = vld [vmem:[#allocation8 + $0x3d0] sm:$0xff] }
  0x24   :  { %v212_v24 = vld [vmem:[#allocation8 + $0x328] sm:$0xff]  ;;  %314 = vmatpush.msra.mxu3 %v216_v20  ;;  %295 = vmatpush.msra.mxu2 %v148_v23  ;;  %v143_v29 = vld [vmem:[#allocation8 + $0x100] sm:$0xff]  ;;  %v158_v13 = vld [vmem:[#allocation8 + $0x178] sm:$0xff] }
  0x25   :  { %v144_v27 = vld [vmem:[#allocation8 + $0x108] sm:$0xff]  ;;  %v211_v30 = vld [vmem:[#allocation8 + $0x320] sm:$0xff]  ;;  %255 = vmatpush.msra.mxu0 %v147_v25  ;;  %274 = vmatpush.msra.mxu1 %v215_v26  ;;  %v226_v14 = vld [vmem:[#allocation8 + $0x398] sm:$0xff] }
  0x26   :  { %v208_v28 = vld [vmem:[#allocation8 + $0x308] sm:$0xff]  ;;  %315 = vmatpush.msra.mxu3 %v212_v24  ;;  %296 = vmatpush.msra.mxu2 %v144_v27  ;;  %v139_v33 = vld [vmem:[#allocation8 + $0xe0] sm:$0xff]  ;;  %v903_v15 = vld [vmem:[#allocation3 + $0x8] sm:$0xff] }
  0x27   :  { %v140_v31 = vld [vmem:[#allocation8 + $0xe8] sm:$0xff]  ;;  %v207_v34 = vld [vmem:[#allocation8 + $0x300] sm:$0xff]  ;;  %256 = vmatpush.msra.mxu0 %v143_v29  ;;  %275 = vmatpush.msra.mxu1 %v211_v30  ;;  %v161_v16 = vld [vmem:[#allocation8 + $0x190] sm:$0xff] }
  0x28   :  { %v204_v32 = vld [vmem:[#allocation8 + $0x2e8] sm:$0xff]  ;;  %316 = vmatpush.msra.mxu3 %v208_v28  ;;  %297 = vmatpush.msra.mxu2 %v140_v31  ;;  %v135_v37 = vld [vmem:[#allocation8 + $0xc0] sm:$0xff]  ;;  %v229_v17 = vld [vmem:[#allocation8 + $0x3b0] sm:$0xff] }
  0x29   :  { %v136_v35 = vld [vmem:[#allocation8 + $0xc8] sm:$0xff]  ;;  %v203_v38 = vld [vmem:[#allocation8 + $0x2e0] sm:$0xff]  ;;  %257 = vmatpush.msra.mxu0 %v139_v33  ;;  %276 = vmatpush.msra.mxu1 %v207_v34  ;;  %v154_v18 = vld [vmem:[#allocation8 + $0x158] sm:$0xff] }
  0x2a   :  { %v200_v36 = vld [vmem:[#allocation8 + $0x2c8] sm:$0xff]  ;;  %317 = vmatpush.msra.mxu3 %v204_v32  ;;  %298 = vmatpush.msra.mxu2 %v136_v35  ;;  %v131_v41 = vld [vmem:[#allocation8 + $0xa0] sm:$0xff]  ;;  %v222_v19 = vld [vmem:[#allocation8 + $0x378] sm:$0xff] }
  0x2b   :  { %v132_v39 = vld [vmem:[#allocation8 + $0xa8] sm:$0xff]  ;;  %v199_v42 = vld [vmem:[#allocation8 + $0x2c0] sm:$0xff]  ;;  %258 = vmatpush.msra.mxu0 %v135_v37  ;;  %277 = vmatpush.msra.mxu1 %v203_v38  ;;  %v157_v20 = vld [vmem:[#allocation8 + $0x170] sm:$0xff] }
  0x2c   :  { %v196_v40 = vld [vmem:[#allocation8 + $0x2a8] sm:$0xff]  ;;  %318 = vmatpush.msra.mxu3 %v200_v36  ;;  %299 = vmatpush.msra.mxu2 %v132_v39  ;;  %v127_v45 = vld [vmem:[#allocation8 + $0x80] sm:$0xff]  ;;  %v225_v21 = vld [vmem:[#allocation8 + $0x390] sm:$0xff] }
  0x2d   :  { %v128_v43 = vld [vmem:[#allocation8 + $0x88] sm:$0xff]  ;;  %v195_v46 = vld [vmem:[#allocation8 + $0x2a0] sm:$0xff]  ;;  %259 = vmatpush.msra.mxu0 %v131_v41  ;;  %278 = vmatpush.msra.mxu1 %v199_v42  ;;  %v150_v22 = vld [vmem:[#allocation8 + $0x138] sm:$0xff] }
  0x2e   :  { %v192_v44 = vld [vmem:[#allocation8 + $0x288] sm:$0xff]  ;;  %319 = vmatpush.msra.mxu3 %v196_v40  ;;  %300 = vmatpush.msra.mxu2 %v128_v43  ;;  %v123_v49 = vld [vmem:[#allocation8 + $0x60] sm:$0xff]  ;;  %v218_v23 = vld [vmem:[#allocation8 + $0x358] sm:$0xff] }
  0x2f   :  { %v124_v47 = vld [vmem:[#allocation8 + $0x68] sm:$0xff]  ;;  %v191_v50 = vld [vmem:[#allocation8 + $0x280] sm:$0xff]  ;;  %260 = vmatpush.msra.mxu0 %v127_v45  ;;  %279 = vmatpush.msra.mxu1 %v195_v46  ;;  %v153_v24 = vld [vmem:[#allocation8 + $0x150] sm:$0xff] }
  0x30   :  { %v188_v48 = vld [vmem:[#allocation8 + $0x268] sm:$0xff]  ;;  %320 = vmatpush.msra.mxu3 %v192_v44  ;;  %301 = vmatpush.msra.mxu2 %v124_v47  ;;  %v119_v53 = vld [vmem:[#allocation8 + $0x40] sm:$0xff]  ;;  %v221_v25 = vld [vmem:[#allocation8 + $0x370] sm:$0xff] }
  0x31   :  { %v120_v51 = vld [vmem:[#allocation8 + $0x48] sm:$0xff]  ;;  %v187_v54 = vld [vmem:[#allocation8 + $0x260] sm:$0xff]  ;;  %261 = vmatpush.msra.mxu0 %v123_v49  ;;  %280 = vmatpush.msra.mxu1 %v191_v50  ;;  %v146_v26 = vld [vmem:[#allocation8 + $0x118] sm:$0xff] }
  0x32   :  { %v184_v52 = vld [vmem:[#allocation8 + $0x248] sm:$0xff]  ;;  %321 = vmatpush.msra.mxu3 %v188_v48  ;;  %302 = vmatpush.msra.mxu2 %v120_v51  ;;  %v115_v57 = vld [vmem:[#allocation8 + $0x20] sm:$0xff]  ;;  %v214_v27 = vld [vmem:[#allocation8 + $0x338] sm:$0xff] }
  0x33   :  { %v116_v55 = vld [vmem:[#allocation8 + $0x28] sm:$0xff]  ;;  %v183_v58 = vld [vmem:[#allocation8 + $0x240] sm:$0xff]  ;;  %262 = vmatpush.msra.mxu0 %v119_v53  ;;  %281 = vmatpush.msra.mxu1 %v187_v54  ;;  %v149_v28 = vld [vmem:[#allocation8 + $0x130] sm:$0xff] }
  0x34   :  { %v180_v56 = vld [vmem:[#allocation8 + $0x228] sm:$0xff]  ;;  %322 = vmatpush.msra.mxu3 %v184_v52  ;;  %303 = vmatpush.msra.mxu2 %v116_v55  ;;  %v111_v62 = vld [vmem:[#allocation8] sm:$0xff]  ;;  %v217_v29 = vld [vmem:[#allocation8 + $0x350] sm:$0xff] }
  0x35   :  { %v112_v59 = vld [vmem:[#allocation8 + $0x8] sm:$0xff]  ;;  %263 = vmatpush.msra.mxu0 %v115_v57  ;;  %282 = vmatpush.msra.mxu1 %v183_v58  ;;  %v179_v63 = vld [vmem:[#allocation8 + $0x220] sm:$0xff]  ;;  %v142_v30 = vld [vmem:[#allocation8 + $0xf8] sm:$0xff] }
  0x36   :  { %v176_v60 = vld [vmem:[#allocation8 + $0x208] sm:$0xff]  ;;  %323 = vmatpush.msra.mxu3 %v180_v56  ;;  %304 = vmatpush.msra.mxu2 %v112_v59  ;;  %v175_v3 = vld [vmem:[#allocation8 + $0x200] sm:$0xff]  ;;  %v210_v31 = vld [vmem:[#allocation8 + $0x318] sm:$0xff] }
  0x37   :  { %264 = vmatpush.msra.mxu0 %v111_v62  ;;  %283 = vmatpush.msra.mxu1 %v179_v63  ;;  %v901_v11 = vld [vmem:[#allocation3] sm:$0xff]  ;;  %v145_v32 = vld [vmem:[#allocation8 + $0x110] sm:$0xff]  ;;  %v138_v34 = vld [vmem:[#allocation8 + $0xd8] sm:$0xff] }
  0x38   :  { %324 = vmatpush.msra.mxu3 %v176_v60  ;;  %369 = vmatpush.msrb.mxu2 %v174_v61  ;;  %v213_v33 = vld [vmem:[#allocation8 + $0x330] sm:$0xff]  ;;  %v206_v35 = vld [vmem:[#allocation8 + $0x2f8] sm:$0xff] }
  0x39   :  { %329 = vmatpush.msrb.mxu0 %v173_v2  ;;  %284 = vmatpush.msra.mxu1 %v175_v3  ;;  %v141_v36 = vld [vmem:[#allocation8 + $0xf0] sm:$0xff]  ;;  %v134_v38 = vld [vmem:[#allocation8 + $0xb8] sm:$0xff]  ;;  %v913_v2 = vld [vmem:[#allocation9] sm:$0xf] }
  0x3a   :  { %389 = vmatpush.msrb.mxu3 %v238_v0  ;;  %370 = vmatpush.msrb.mxu2 %v170_v1  ;;  %v209_v37 = vld [vmem:[#allocation8 + $0x310] sm:$0xff]  ;;  %v202_v39 = vld [vmem:[#allocation8 + $0x2d8] sm:$0xff]  ;;  %v241_v3 = vperm.slane %v913_v2, 0 }
  0x3b   :  { %330 = vmatpush.msrb.mxu0 %v169_v6  ;;  %349 = vmatpush.msrb.mxu1 %v237_v7  ;;  %v137_v40 = vld [vmem:[#allocation8 + $0xd0] sm:$0xff]  ;;  %v130_v42 = vld [vmem:[#allocation8 + $0x98] sm:$0xff] }
  0x3c   :  { %390 = vmatpush.msrb.mxu3 %v234_v4  ;;  %371 = vmatpush.msrb.mxu2 %v166_v5  ;;  %v205_v41 = vld [vmem:[#allocation8 + $0x2f0] sm:$0xff]  ;;  %v198_v43 = vld [vmem:[#allocation8 + $0x2b8] sm:$0xff]  ;;  %v242_v4 = vperm.slane %v913_v2, 1 }
  0x3d   :  { %331 = vmatpush.msrb.mxu0 %v165_v10  ;;  %305 = vmatmul.f32.vlgmr.msra.gmra.mxu2 %v901_v11  ;;  %v133_v44 = vld [vmem:[#allocation8 + $0xb0] sm:$0xff]  ;;  %v126_v46 = vld [vmem:[#allocation8 + $0x78] sm:$0xff] }
  0x3e   :  { %391 = vmatpush.msrb.mxu3 %v230_v8  ;;  %372 = vmatpush.msrb.mxu2 %v162_v9  ;;  %v201_v45 = vld [vmem:[#allocation8 + $0x2d0] sm:$0xff]  ;;  %v194_v47 = vld [vmem:[#allocation8 + $0x298] sm:$0xff] }
  0x3f   :  { %350 = vmatpush.msrb.mxu1 %v233_v12  ;;  %325 = vmatmul.f32.vlgmr.msra.gmra.mxu3 %v903_v15  ;;  %v129_v48 = vld [vmem:[#allocation8 + $0x90] sm:$0xff]  ;;  %v122_v50 = vld [vmem:[#allocation8 + $0x58] sm:$0xff] }
  0x40   :  { %373 = vmatpush.msrb.mxu2 %v158_v13  ;;  %392 = vmatpush.msrb.mxu3 %v226_v14  ;;  %v197_v49 = vld [vmem:[#allocation8 + $0x2b0] sm:$0xff]  ;;  %v190_v51 = vld [vmem:[#allocation8 + $0x278] sm:$0xff] }
  0x41   :  { %332 = vmatpush.msrb.mxu0 %v161_v16  ;;  %351 = vmatpush.msrb.mxu1 %v229_v17  ;;  %v125_v52 = vld [vmem:[#allocation8 + $0x70] sm:$0xff]  ;;  %v118_v54 = vld [vmem:[#allocation8 + $0x38] sm:$0xff] }
  0x42   :  { %374 = vmatpush.msrb.mxu2 %v154_v18  ;;  %393 = vmatpush.msrb.mxu3 %v222_v19  ;;  %v193_v53 = vld [vmem:[#allocation8 + $0x290] sm:$0xff]  ;;  %v186_v55 = vld [vmem:[#allocation8 + $0x258] sm:$0xff] }
  0x43   :  { %333 = vmatpush.msrb.mxu0 %v157_v20  ;;  %352 = vmatpush.msrb.mxu1 %v225_v21  ;;  %v121_v56 = vld [vmem:[#allocation8 + $0x50] sm:$0xff]  ;;  %v114_v58 = vld [vmem:[#allocation8 + $0x18] sm:$0xff] }
  0x44   :  { %375 = vmatpush.msrb.mxu2 %v150_v22  ;;  %394 = vmatpush.msrb.mxu3 %v218_v23  ;;  %v189_v57 = vld [vmem:[#allocation8 + $0x270] sm:$0xff]  ;;  %v182_v59 = vld [vmem:[#allocation8 + $0x238] sm:$0xff]  ;;  %v484_v22 = vld [vmem:[#allocation11 + $0x40] sm:$0xff] }
  0x45   :  { %265 = vmatmul.f32.vlgmr.msra.gmra.mxu0 %v901_v11  ;;  %353 = vmatpush.msrb.mxu1 %v221_v25  ;;  %v117_v60 = vld [vmem:[#allocation8 + $0x30] sm:$0xff]  ;;  %v178_v62 = vld [vmem:[#allocation8 + $0x218] sm:$0xff] }
  0x46   :  { %334 = vmatpush.msrb.mxu0 %v153_v24  ;;  %376 = vmatpush.msrb.mxu2 %v146_v26  ;;  %v185_v61 = vld [vmem:[#allocation8 + $0x250] sm:$0xff]  ;;  %v491_v5 = vld [vmem:[#allocation11 + $0x78] sm:$0xff] }
  0x47   :  { %395 = vmatpush.msrb.mxu3 %v214_v27  ;;  %285 = vmatmul.f32.vlgmr.msra.gmra.mxu1 %v903_v15  ;;  %v113_v63 = vld [vmem:[#allocation8 + $0x10] sm:$0xff]  ;;  %v487_v18 = vld [vmem:[#allocation11 + $0x58] sm:$0xff] }
  0x48   :  { %335 = vmatpush.msrb.mxu0 %v149_v28  ;;  %354 = vmatpush.msrb.mxu1 %v217_v29  ;;  %v181_v0 = vld [vmem:[#allocation8 + $0x230] sm:$0xff]  ;;  %v483_v24 = vld [vmem:[#allocation11 + $0x38] sm:$0xff] }
  0x49   :  { %377 = vmatpush.msrb.mxu2 %v142_v30  ;;  %396 = vmatpush.msrb.mxu3 %v210_v31  ;;  %v177_v1 = vld [vmem:[#allocation8 + $0x210] sm:$0xff]  ;;  %v480_v30 = vld [vmem:[#allocation11 + $0x20] sm:$0xff]  ;;  %v479_v31 = vld [vmem:[#allocation11 + $0x18] sm:$0xff] }
  0x4a   :  { %336 = vmatpush.msrb.mxu0 %v145_v32  ;;  %355 = vmatpush.msrb.mxu1 %v213_v33  ;;  %v490_v6 = vld [vmem:[#allocation11 + $0x70] sm:$0xff]  ;;  %v489_v12 = vld [vmem:[#allocation11 + $0x68] sm:$0xff]  ;;  %v243_v32 = vperm.slane %v913_v2, 2 }
  0x4b   :  { %378 = vmatpush.msrb.mxu2 %v138_v34  ;;  %397 = vmatpush.msrb.mxu3 %v206_v35  ;;  %v486_v20 = vld [vmem:[#allocation11 + $0x50] sm:$0xff]  ;;  %v485_v21 = vld [vmem:[#allocation11 + $0x48] sm:$0xff] }
  0x4c   :  { %337 = vmatpush.msrb.mxu0 %v141_v36  ;;  %356 = vmatpush.msrb.mxu1 %v209_v37  ;;  %v482_v28 = vld [vmem:[#allocation11 + $0x30] sm:$0xff]  ;;  %v481_v29 = vld [vmem:[#allocation11 + $0x28] sm:$0xff] }
  0x4d   :  { %379 = vmatpush.msrb.mxu2 %v134_v38  ;;  %398 = vmatpush.msrb.mxu3 %v202_v39  ;;  %v478_v33 = vld [vmem:[#allocation11 + $0x10] sm:$0xff]  ;;  %v244_v38 = vperm.slane %v913_v2, 3  ;;  %v477_v39 = vld [vmem:[#allocation11 + $0x8] sm:$0xff] }
  0x4e   :  { %338 = vmatpush.msrb.mxu0 %v137_v40  ;;  %357 = vmatpush.msrb.mxu1 %v205_v41 }
  0x4f   :  { %380 = vmatpush.msrb.mxu2 %v130_v42  ;;  %399 = vmatpush.msrb.mxu3 %v198_v43 }
  0x50   :  { %339 = vmatpush.msrb.mxu0 %v133_v44  ;;  %358 = vmatpush.msrb.mxu1 %v201_v45 }
  0x51   :  { %381 = vmatpush.msrb.mxu2 %v126_v46  ;;  %400 = vmatpush.msrb.mxu3 %v194_v47  ;;  %v476_v47 = vld [vmem:[#allocation11] sm:$0xff] }
  0x52   :  { %340 = vmatpush.msrb.mxu0 %v129_v48  ;;  %359 = vmatpush.msrb.mxu1 %v197_v49 }
  0x53   :  { %382 = vmatpush.msrb.mxu2 %v122_v50  ;;  %401 = vmatpush.msrb.mxu3 %v190_v51 }
  0x54   :  { %341 = vmatpush.msrb.mxu0 %v125_v52  ;;  %360 = vmatpush.msrb.mxu1 %v193_v53 }
  0x55   :  { %383 = vmatpush.msrb.mxu2 %v118_v54  ;;  %402 = vmatpush.msrb.mxu3 %v186_v55 }
  0x56   :  { %342 = vmatpush.msrb.mxu0 %v121_v56  ;;  %361 = vmatpush.msrb.mxu1 %v189_v57 }
  0x57   :  { %384 = vmatpush.msrb.mxu2 %v114_v58  ;;  %403 = vmatpush.msrb.mxu3 %v182_v59 }
  0x58   :  { %343 = vmatpush.msrb.mxu0 %v117_v60  ;;  %362 = vmatpush.msrb.mxu1 %v185_v61 }
  0x59   :  { %385 = vmatmul.f32.vlgmr.msrb.gmra.mxu2 %v901_v11  ;;  %404 = vmatpush.msrb.mxu3 %v178_v62  ;;  %v467_v62 = vld [vmem:[#allocation6] sm:$0xff] }
  0x5a   :  { %344 = vmatpush.msrb.mxu0 %v113_v63  ;;  %363 = vmatpush.msrb.mxu1 %v181_v0 }
  0x5b   :  { %405 = vmatmul.f32.vlgmr.msrb.gmra.mxu3 %v903_v15  ;;  %345 = vmatmul.f32.vlgmr.msrb.gmra.mxu0 %v901_v11 }
  0x5c   :  { %364 = vmatpush.msrb.mxu1 %v177_v1  ;;  %492 = vmatpush.msra.mxu0 %v491_v5 }
  0x5d   :  { %365 = vmatmul.f32.vlgmr.msrb.gmra.mxu1 %v903_v15  ;;  %v488_v15 = vld [vmem:[#allocation11 + $0x60] sm:$0xff] }
  0x5e   :  { %493 = vmatpush.msra.mxu0 %v490_v6 }
  0x60   :  { %494 = vmatpush.msra.mxu0 %v489_v12 }
  0x62   :  { %495 = vmatpush.msra.mxu0 %v488_v15 }
  0x64   :  { %496 = vmatpush.msra.mxu0 %v487_v18 }
  0x66   :  { %497 = vmatpush.msra.mxu0 %v486_v20 }
  0x68   :  { %498 = vmatpush.msra.mxu0 %v485_v21 }
  0x6a   :  { %499 = vmatpush.msra.mxu0 %v484_v22  ;;  %v606_v22 = vld [vmem:[%s944_s5] ss:$0 sm:$0xff]  ;;  %s546_s5 = sshll.u32 %s839_s14, 4  ;;  %s547_s5 = int_to_ptr.vmem [resolvable:$true] %s546_s5 }
  0x6c   :  { %500 = vmatpush.msra.mxu0 %v483_v24 }
  0x6e   :  { %501 = vmatpush.msra.mxu0 %v482_v28 }
  0x70   :  { %502 = vmatpush.msra.mxu0 %v481_v29 }
  0x72   :  { %503 = vmatpush.msra.mxu0 %v480_v30 }
  0x74   :  { %504 = vmatpush.msra.mxu0 %v479_v31 }
  0x76   :  { %505 = vmatpush.msra.mxu0 %v478_v33 }
  0x78   :  { %506 = vmatpush.msra.mxu0 %v477_v39 }
  0x7a   :  { %507 = vmatpush.msra.mxu0 %v476_v47 }
  0xc0   :  { %v306_v8 = vpop.f32.mrf.mxu2 }
  0xc1   :  { %v307_v10 = vadd.f32 %v306_v8, %v242_v4 }
  0xc2   :  { %v266_v7 = vpop.f32.mrf.mxu0  ;;  %v326_v13 = vpop.f32.mrf.mxu3 }
  0xc3   :  { %v267_v9 = vadd.f32 %v266_v7, %v241_v3  ;;  %v327_v14 = vadd.f32 %v326_v13, %v307_v10 }
  0xc4   :  { %v286_v11 = vpop.f32.mrf.mxu1 }
  0xc5   :  { %v287_v16 = vadd.f32 %v286_v11, %v267_v9  ;;  %v592_v17 = vmul.f32 -1.442695, %v327_v14 }
  0xc7   :  { %v591_v19 = vmul.f32 -1.442695, %v287_v16  ;;  %607 = vpow2.f32 %v592_v17 }
  0xc9   :  { %609 = vpow2.f32 %v591_v19 }
  0xcd   :  { %v608_v23 = vpop.eup %607 }
  0xce   :  { %v431_v26 = vadd.f32 1.0, %v608_v23 }
  0xcf   :  { %v610_v25 = vpop.eup %609 }
  0xd0   :  { %v412_v27 = vadd.f32 1.0, %v610_v25  ;;  %611 = vrcp.f32 %v431_v26  ;;  %vm437_vm0 = vweird.f32 %v431_v26  ;;  %v443_v41 = vand.u32 2147483648, %v431_v26 }
  0xd1   :  { %v441_v43 = vand.u32 2147483647, %v431_v26 }
  0xd2   :  { %613 = vrcp.f32 %v412_v27  ;;  %vm418_vm2 = vweird.f32 %v412_v27  ;;  %v424_v46 = vand.u32 2147483648, %v412_v27  ;;  %v422_v50 = vand.u32 2147483647, %v412_v27 }
  0xd3   :  { %v444_v55 = vor.u32 1.1754944e-38, %v443_v41  ;;  %vm442_vm6 = vcmp.eq.f32.partialorder %v441_v43, 8.507059e+37 }
  0xd4   :  { %v425_v58 = vor.u32 1.1754944e-38, %v424_v46  ;;  %vm423_vm7 = vcmp.eq.f32.partialorder %v422_v50, 8.507059e+37 }
  0xd6   :  { %v612_v34 = vpop.eup %611 }
  0xd7   :  { %v433_v36 = vmul.f32 %v612_v34, %v431_v26  ;;  %vm438_vm1 = vweird.f32 %v612_v34 }
  0xd8   :  { %v614_v35 = vpop.eup %613  ;;  %v346_v37 = vpop.f32.mrf.mxu0  ;;  %vm920_vm4 = vmor %vm437_vm0, %vm438_vm1 }
  0xd9   :  { %v414_v40 = vmul.f32 %v614_v35, %v412_v27  ;;  %v347_v42 = vadd.f32 %v346_v37, %v243_v32  ;;  %v434_v44 = vsub.f32 1.0, %v433_v36  ;;  %vm419_vm3 = vweird.f32 %v614_v35 }
  0xda   :  { %v366_v45 = vpop.f32.mrf.mxu1  ;;  %vm420_vm5 = vmor %vm418_vm2, %vm419_vm3 }
  0xdb   :  { %v415_v48 = vsub.f32 1.0, %v414_v40  ;;  %v367_v49 = vadd.f32 %v366_v45, %v347_v42  ;;  %v435_v52 = vmul.f32 %v612_v34, %v434_v44 }
  0xdc   :  { %v386_v51 = vpop.f32.mrf.mxu2 }
  0xdd   :  { %v387_v53 = vadd.f32 %v386_v51, %v244_v38  ;;  %v416_v56 = vmul.f32 %v614_v35, %v415_v48  ;;  %615 = vtanh.f32 %v367_v49  ;;  %v436_v59 = vadd.f32 %v612_v34, %v435_v52 }
  0xde   :  { %v406_v57 = vpop.f32.mrf.mxu3 }
  0xdf   :  { %v407_v60 = vadd.f32 %v406_v57, %v387_v53  ;;  %v417_v61 = vadd.f32 %v614_v35, %v416_v56  ;;  %v440_v63 = vsel %vm920_vm4, %v612_v34, %v436_v59 }
  0xe0   :  { %v445_v2 = vsel %vm442_vm6, %v444_v55, %v440_v63 }
  0xe1   :  { %v593_v0 = vmul.f32 -1.442695, %v407_v60  ;;  %v421_v1 = vsel %vm420_vm5, %v614_v35, %v417_v61  ;;  %v468_v4 = vmul.f32 %v467_v62, %v445_v2 }
  0xe2   :  { %v426_v3 = vsel %vm423_vm7, %v425_v58, %v421_v1 }
  0xe3   :  { %617 = vpow2.f32 %v593_v0  ;;  %v616_v5 = vpop.eup %615 }
  0xe4   :  { %v469_v6 = vmul.f32 %v616_v5, %v426_v3 }
  0xe6   :  { %v470_v7 = vadd.f32 %v469_v6, %v468_v4 }
  0xe8   :  { %474 = vst [vmem:[#allocation13] sm:$0xff] %v470_v7 }
  0xe9   :  { %v618_v8 = vpop.eup %617  ;;  %562 = dma.vmem_to_hbm [thread:$0]  %s558_s13, 128, %s560_s11, [#allocation14]  }
  0xea   :  { %v451_v9 = vadd.f32 1.0, %v618_v8 }
  0xec   :  { %619 = vrcp.f32 %v451_v9  ;;  %v463_v11 = vand.u32 2147483648, %v451_v9  ;;  %v461_v15 = vand.u32 2147483647, %v451_v9  ;;  %vm457_vm9 = vweird.f32 %v451_v9 }
  0xed   :  { %621 = vtanh.f32 %v470_v7 }
  0xee   :  { %v464_v17 = vor.u32 1.1754944e-38, %v463_v11  ;;  %vm462_vm11 = vcmp.eq.f32.partialorder %v461_v15, 8.507059e+37 }
  0xf2   :  { %v620_v10 = vpop.eup %619 }
  0xf3   :  { %v453_v12 = vmul.f32 %v620_v10, %v451_v9  ;;  %vm458_vm8 = vweird.f32 %v620_v10  ;;  %v622_v19 = vpop.eup %621 }
  0xf4   :  { %vm459_vm10 = vmor %vm457_vm9, %vm458_vm8 }
  0xf5   :  { %v454_v13 = vsub.f32 1.0, %v453_v12 }
  0xf7   :  { %v455_v14 = vmul.f32 %v620_v10, %v454_v13 }
  0xf9   :  { %v456_v16 = vadd.f32 %v620_v10, %v455_v14 }
  0xfb   :  { %v460_v18 = vsel %vm459_vm10, %v620_v10, %v456_v16 }
  0xfc   :  { %v465_v20 = vsel %vm462_vm11, %v464_v17, %v460_v18 }
  0xfd   :  { %v472_v21 = vmul.f32 %v622_v19, %v465_v20 }
  0xff   :  { %508 = vmatmul.f32.vlgmr.msra.gmra.mxu0 %v472_v21  ;;  %473 = vst [vmem:[#allocation12] sm:$0xff] %v472_v21 }
 0x100   :  { %551 = dma.vmem_to_hbm [thread:$0]  %s547_s5, 128, %s549_s17, [#allocation5]  }
 0x17c   :  { %v509_v23 = vpop.f32.mrf.mxu0 }
 0x17d   :  { %v512_v24 = vadd.f32 %v606_v22, %v509_v23 }
 0x17f   :  { %518 = vmax.xlane.f32.xlu0 %v512_v24 }
 0x1f2   :  { %v519_v25 = vpop.xlane.xlu0 %518 }
 0x1f3   :  { %v520_v26 = vsub.f32 %v512_v24, %v519_v25 }
 0x1f5   :  { %v521_v27 = vmul.f32 1.442695, %v520_v26 }
 0x1f7   :  { %623 = vpow2.f32 %v521_v27 }
 0x1fd   :  { %v624_v28 = vpop.eup %623 }
 0x1fe   :  { %523 = vadd.xlane.f32.xlu0 %v624_v28 }
 0x271   :  { %v524_v29 = vpop.xlane.xlu0 %523 }
 0x272   :  { %625 = vrcp.f32 %v524_v29  ;;  %v536_v33 = vand.u32 2147483648, %v524_v29  ;;  %v534_v35 = vand.u32 2147483647, %v524_v29  ;;  %vm530_vm13 = vweird.f32 %v524_v29 }
 0x274   :  { %v537_v37 = vor.u32 1.1754944e-38, %v536_v33  ;;  %vm535_vm15 = vcmp.eq.f32.partialorder %v534_v35, 8.507059e+37 }
 0x278   :  { %v626_v30 = vpop.eup %625 }
 0x279   :  { %v526_v31 = vmul.f32 %v626_v30, %v524_v29  ;;  %vm531_vm12 = vweird.f32 %v626_v30 }
 0x27a   :  { %vm532_vm14 = vmor %vm530_vm13, %vm531_vm12 }
 0x27b   :  { %v527_v32 = vsub.f32 1.0, %v526_v31 }
 0x27d   :  { %v528_v34 = vmul.f32 %v626_v30, %v527_v32 }
 0x27f   :  { %v529_v36 = vadd.f32 %v626_v30, %v528_v34 }
 0x281   :  { %v533_v38 = vsel %vm532_vm14, %v626_v30, %v529_v36 }
 0x282   :  { %v538_v39 = vsel %vm535_vm15, %v537_v37, %v533_v38 }
 0x283   :  { %v539_v40 = vmul.f32 %v624_v28, %v538_v39 }
 0x285   :  { %540 = vst [vmem:[#allocation15] sm:$0xff] %v539_v40 }
 0x286   :  { %573 = dma.vmem_to_hbm [thread:$0]  %s569_s1, 128, %s571_s19, [#allocation14]  }
 0x287   :  { %825 = dma.done.wait [#allocation5], 128  }
 0x288   :  { %826 = vsyncadd [#allocation5], 4294967168 }
 0x289   :  { %827 = dma.done.wait [#allocation14], 256  }
 0x28a   :  { %828 = vsyncadd [#allocation14], 4294967040 }
 0x28b   :  { %586 = vsyncpa [#allocation4], 1 }
 0x28c   :  { %587 = vsyncpa [#allocation7], 1 }
 0x28d   :  { %588 = vsyncpa [#allocation10], 1 }
 0x28e   :  { %589 = vsyncpa [#allocation5], 1 }
 0x28f   :  { %590 = vsyncpa [#allocation14], 1 }

</bundles_post_ra>
